<compile_context>
chip_gen: v6e
topology: v6e:2x2x1
jax: 0.10.0
libtpu: 0.0.40
codegen_flags: <defaults>
</compile_context>

<pallas_src>
import functools

import jax
import jax.numpy as jnp
from jax.experimental import pallas as pl
from jax.experimental.pallas import tpu as pltpu


def _label_smoothing_kernel(logit_ref, target_ref, out_ref, *,
                            total_rows, tile_n, num_classes, ignore_index,
                            smoothing):
    confidence = jnp.float32(1.0 - smoothing)
    smooth_val = jnp.float32(smoothing / (num_classes - 1))

    i = pl.program_id(0)

    # DMA stays in the caller's dtype (e.g. bf16); upcast in-register.
    logit = logit_ref[...].astype(jnp.float32)           # (tile_n, C) f32
    tgt = target_ref[...]                                 # (tile_n, 1) int32

    # Fused single-pass weighted reduce:
    #   per_row = -sum_c( (onehot ? confidence : smooth) * logit[., c] )
    class_ids = jax.lax.broadcasted_iota(jnp.int32, logit.shape, 1)
    weights = jnp.where(class_ids == tgt, confidence, smooth_val)   # (tile_n, C)
    per_row = -jnp.sum(weights * logit, axis=-1, keepdims=True)     # (tile_n, 1)

    # Mask ignored rows and rows past N (ragged/padded tile rows may hold
    # garbage; select keeps NaN/Inf from propagating).
    row_ids = i * tile_n + jax.lax.broadcasted_iota(jnp.int32, (tile_n, 1), 0)
    valid = (tgt != ignore_index) & (row_ids < total_rows)
    per_row = jnp.where(valid, per_row, 0.0)

    total = jnp.sum(per_row)                              # scalar block partial

    # Lane/sublane-dense (8, 128) store: partial at [0, 0], zeros elsewhere.
    r8 = jax.lax.broadcasted_iota(jnp.int32, (8, 128), 0)
    c128 = jax.lax.broadcasted_iota(jnp.int32, (8, 128), 1)
    out_ref[...] = jnp.where((r8 == 0) & (c128 == 0), total, jnp.float32(0.0))


def _vmem_capacity_bytes():
    """Physical VMEM per TensorCore; conservative 64 MiB (v7x) fallback."""
    try:
        cap = int(getattr(pltpu.get_tpu_info(), "vmem_capacity_bytes", 0))
        if cap > 0:
            return cap
    except Exception:
        pass
    return 64 * 1024 * 1024


def _choose_tiling(n_rows, n_classes, itemsize):
    """Return (tile_n, vmem_limit_bytes), generation-aware.

    Per-row in-flight footprint = double-buffered input DMA slab in the
    caller's dtype + ~3x f32 temporaries (upcast logit, weights, product)
    from the in-kernel compute chain.
    """
    vmem_cap = _vmem_capacity_bytes()
    vmem_limit = (vmem_cap * 3) // 4                 # ~96 MiB (v5e/v6e), ~48 MiB (v7x)

    per_row = 2 * n_classes * itemsize + 3 * n_classes * 4
    budget = int(vmem_limit * 0.85)                  # headroom for compiler internals
    max_rows = max(8, (budget // per_row) // 8 * 8)

    # Round N UP so small/ragged N (e.g. 18) fits one block; the in-kernel
    # row mask handles padded rows.
    n_aligned = max(8, ((n_rows + 7) // 8) * 8)
    tile_n = int(min(max_rows, n_aligned))

    # Keep >= 2 grid blocks when the work is large enough for the split to
    # matter (v7x megacore); harmless on single-TC v5e/v6e.
    if n_aligned * n_classes * itemsize >= 4 * 1024 * 1024:
        half = ((n_aligned // 2) + 7) // 8 * 8       # round_up(cdiv(n_aligned,2), 8)
        tile_n = int(min(tile_n, max(8, half)))

    return tile_n, int(vmem_limit)


def label_smoothing_loss(logit, target, *, num_classes, ignore_index,
                         smoothing=0.1, tile_n=None):
    """logit: (N, C) float (f32 or bf16), log-prob shaped; target: (N,) ints.

    Returns scalar f32 sum-loss, matching kospeech LabelSmoothingLoss.forward.
    """
    N, C = logit.shape
    assert C == num_classes
    assert jnp.issubdtype(logit.dtype, jnp.floating)

    itemsize = jnp.dtype(logit.dtype).itemsize
    auto_tile_n, vmem_limit = _choose_tiling(N, C, itemsize)
    if tile_n is None:
        tile_n = auto_tile_n
    assert tile_n % 8 == 0

    num_blocks = (N + tile_n - 1) // tile_n
    target2d = target.astype(jnp.int32).reshape(N, 1)

    kernel = functools.partial(
        _label_smoothing_kernel,
        total_rows=N,
        tile_n=tile_n,
        num_classes=num_classes,
        ignore_index=ignore_index,
        smoothing=smoothing,
    )

    cost = pl.CostEstimate(
        flops=5 * N * C,                               # cmp/select/mul/reduce chain
        transcendentals=0,
        bytes_accessed=N * C * itemsize + N * 4 + num_blocks * 8 * 128 * 4,
    )

    partials = pl.pallas_call(
        kernel,
        out_shape=jax.ShapeDtypeStruct((num_blocks * 8, 128), jnp.float32),
        grid_spec=pltpu.PrefetchScalarGridSpec(
            num_scalar_prefetch=0,
            grid=(num_blocks,),
            in_specs=[
                pl.BlockSpec((tile_n, C), lambda i: (i, 0)),
                pl.BlockSpec((tile_n, 1), lambda i: (i, 0)),
            ],
            out_specs=pl.BlockSpec((8, 128), lambda i: (i, 0)),
        ),
        compiler_params=pltpu.CompilerParams(
            dimension_semantics=("parallel",),          # independent block partials
            vmem_limit_bytes=vmem_limit,
        ),
        cost_estimate=cost,
    )(logit, target2d)

    # Tiny (num_blocks*8, 128) partial array; final reduce in XLA.
    return jnp.sum(partials)


if __name__ == "__main__":
    # Small shapes: batch=2, seq=9 -> N=18 tokens (deliberately not a multiple
    # of 8 to exercise the ragged-row masking), num_classes=32.
    num_classes = 32
    ignore_index = 0          # pad id, a valid class index (as in kospeech)
    smoothing = 0.1

    batch, seq = 2, 9
    N = batch * seq

    key = jax.random.PRNGKey(0)
    k_logit, k_tgt = jax.random.split(key)

    # "logarithm shape" probability distribution -> log_softmax of random scores.
    scores = jax.random.normal(k_logit, (N, num_classes), dtype=jnp.float32)
    logit = jax.nn.log_softmax(scores, axis=-1)

    target = jax.random.randint(k_tgt, (N,), 0, num_classes, dtype=jnp.int32)
    target = target.at[3].set(ignore_index).at[10].set(ignore_index)

    def ref_loss(lg, tg):
        lg = lg.astype(jnp.float32)
        conf = 1.0 - smoothing
        sm = smoothing / (num_classes - 1)
        onehot = jax.nn.one_hot(tg, num_classes, dtype=jnp.float32)
        smoothed = onehot * conf + (1.0 - onehot) * sm
        smoothed = jnp.where((tg != ignore_index)[:, None], smoothed, 0.0)
        return jnp.sum(-smoothed * lg)

    # f32 path
    loss_f32 = label_smoothing_loss(
        logit, target, num_classes=num_classes,
        ignore_index=ignore_index, smoothing=smoothing)
    jax.block_until_ready(loss_f32)
    assert jnp.allclose(loss_f32, ref_loss(logit, target),
                        rtol=1e-5, atol=1e-5), (loss_f32, ref_loss(logit, target))

    # bf16 ingestion path (half the DMA bytes; upcast happens inside the kernel)
    logit_bf16 = logit.astype(jnp.bfloat16)
    loss_bf16 = label_smoothing_loss(
        logit_bf16, target, num_classes=num_classes,
        ignore_index=ignore_index, smoothing=smoothing)
    jax.block_until_ready(loss_bf16)
    assert jnp.allclose(loss_bf16, ref_loss(logit_bf16, target),
                        rtol=1e-3, atol=1e-3), (loss_bf16, ref_loss(logit_bf16, target))

    # Explicit multi-block path (forces grid > 1 to exercise block partials).
    loss_blocked = label_smoothing_loss(
        logit, target, num_classes=num_classes,
        ignore_index=ignore_index, smoothing=smoothing, tile_n=8)
    jax.block_until_ready(loss_blocked)
    assert jnp.allclose(loss_blocked, ref_loss(logit, target),
                        rtol=1e-5, atol=1e-5), (loss_blocked, ref_loss(logit, target))

    print("KERNEL_OK")
</pallas_src>

<mosaic_0001>
module attributes {stable_mosaic.version = 11 : i64} {
  func.func @_label_smoothing_kernel(%arg0: i32, %arg1: memref<24x32xf32, #tpu.memory_space<vmem>>, %arg2: memref<24x1xi32, #tpu.memory_space<vmem>>, %arg3: memref<8x128xf32, #tpu.memory_space<vmem>>) attributes {dimension_semantics = [#tpu.dimension_semantics<parallel>], iteration_bounds = array<i64: 1>, scalar_prefetch = 0 : i64, scratch_operands = 0 : i64, tpu.core_type = #tpu.core_type<tc>, window_params = [{transform_indices = @transform_0, window_bounds = array<i64: 24, 32>}, {transform_indices = @transform_1, window_bounds = array<i64: 24, 1>}, {transform_indices = @transform_2, window_bounds = array<i64: 8, 128>}]} {
    %c0 = arith.constant 0 : index
    %c0_0 = arith.constant 0 : index
    %0 = vector.load %arg1[%c0, %c0_0] : memref<24x32xf32, #tpu.memory_space<vmem>>, vector<24x32xf32>
    %c0_1 = arith.constant 0 : index
    %c0_2 = arith.constant 0 : index
    %1 = vector.load %arg2[%c0_1, %c0_2] : memref<24x1xi32, #tpu.memory_space<vmem>>, vector<24x1xi32>
    %2 = tpu.iota {dimensions = array<i32: 1>} : vector<24x32xi32>
    %3 = vector.broadcast %1 : vector<24x1xi32> to vector<24x32xi32>
    %4 = arith.cmpi eq, %2, %3 : vector<24x32xi32>
    %cst = arith.constant 0.899999976 : f32
    %cst_3 = arith.constant 0.0032258064 : f32
    %5 = vector.broadcast %cst : f32 to vector<24x32xf32>
    %6 = vector.broadcast %cst_3 : f32 to vector<24x32xf32>
    %7 = arith.select %4, %5, %6 : vector<24x32xi1>, vector<24x32xf32>
    %8 = arith.mulf %7, %0 : vector<24x32xf32>
    %cst_4 = arith.constant dense<0.000000e+00> : vector<24xf32>
    %9 = vector.multi_reduction <add>, %8, %cst_4 [1] : vector<24x32xf32> to vector<24xf32>
    %10 = vector.shape_cast %9 : vector<24xf32> to vector<24x1xf32>
    %cst_5 = arith.constant 0.000000e+00 : f32
    %11 = vector.broadcast %cst_5 : f32 to vector<24x1xf32>
    %12 = arith.subf %11, %10 : vector<24x1xf32>
    %c24_i32 = arith.constant 24 : i32
    %13 = arith.muli %arg0, %c24_i32 : i32
    %14 = tpu.iota {dimensions = array<i32: 0>} : vector<24x1xi32>
    %15 = vector.broadcast %13 : i32 to vector<24x1xi32>
    %16 = arith.addi %15, %14 : vector<24x1xi32>
    %c0_i32 = arith.constant 0 : i32
    %17 = vector.broadcast %c0_i32 : i32 to vector<24x1xi32>
    %18 = arith.cmpi ne, %1, %17 : vector<24x1xi32>
    %c18_i32 = arith.constant 18 : i32
    %19 = vector.broadcast %c18_i32 : i32 to vector<24x1xi32>
    %20 = arith.cmpi slt, %16, %19 : vector<24x1xi32>
    %21 = arith.andi %18, %20 : vector<24x1xi1>
    %cst_6 = arith.constant 0.000000e+00 : f32
    %22 = vector.broadcast %cst_6 : f32 to vector<24x1xf32>
    %23 = arith.select %21, %12, %22 : vector<24x1xi1>, vector<24x1xf32>
    %24 = vector.shape_cast %23 : vector<24x1xf32> to vector<1x24x1xf32>
    %cst_7 = arith.constant dense<0.000000e+00> : vector<1xf32>
    %25 = vector.multi_reduction <add>, %24, %cst_7 [1, 2] : vector<1x24x1xf32> to vector<1xf32>
    %26 = vector.shape_cast %25 : vector<1xf32> to vector<1x1x1xf32>
    %27 = vector.extract %26[0, 0, 0] : f32 from vector<1x1x1xf32>
    %28 = tpu.iota {dimensions = array<i32: 0>} : vector<8x128xi32>
    %29 = tpu.iota {dimensions = array<i32: 1>} : vector<8x128xi32>
    %c0_i32_8 = arith.constant 0 : i32
    %30 = vector.broadcast %c0_i32_8 : i32 to vector<8x128xi32>
    %31 = arith.cmpi eq, %28, %30 : vector<8x128xi32>
    %c0_i32_9 = arith.constant 0 : i32
    %32 = vector.broadcast %c0_i32_9 : i32 to vector<8x128xi32>
    %33 = arith.cmpi eq, %29, %32 : vector<8x128xi32>
    %34 = arith.andi %31, %33 : vector<8x128xi1>
    %cst_10 = arith.constant 0.000000e+00 : f32
    %35 = vector.broadcast %27 : f32 to vector<8x128xf32>
    %36 = vector.broadcast %cst_10 : f32 to vector<8x128xf32>
    %37 = arith.select %34, %35, %36 : vector<8x128xi1>, vector<8x128xf32>
    %c0_11 = arith.constant 0 : index
    %c0_12 = arith.constant 0 : index
    %38 = vector.load %arg3[%c0_11, %c0_12] : memref<8x128xf32, #tpu.memory_space<vmem>>, vector<8x128xf32>
    tpu.vector_store %arg3[%c0_11, %c0_12], %37 {strides = array<i32>} : memref<8x128xf32, #tpu.memory_space<vmem>>, vector<8x128xf32>,
    return
  }
  func.func @transform_0(%arg0: i32) -> (i32, i32) {
    %c0_i32 = arith.constant 0 : i32
    %c0_i32_0 = arith.constant 0 : i32
    return %arg0, %c0_i32 : i32, i32
  }
  func.func @transform_1(%arg0: i32) -> (i32, i32) {
    %c0_i32 = arith.constant 0 : i32
    %c0_i32_0 = arith.constant 0 : i32
    return %arg0, %c0_i32 : i32, i32
  }
  func.func @transform_2(%arg0: i32) -> (i32, i32) {
    %c0_i32 = arith.constant 0 : i32
    %c0_i32_0 = arith.constant 0 : i32
    return %arg0, %c0_i32 : i32, i32
  }
}

</mosaic_0001>

<bundles_post_ra>
// kernel: tpu_custom_call.1
= control target key start
LH: loop header
LB: loop body
LE: loop exit
PB: predicated region body
PF: predicated region fallthrough
CT: control target
= control target key end

     0   :  { %v136_v2 = vmov 0   ;;  %s175_s0 = inlined_call_operand.vmem [shape: f32[18,32], index: 0, kind: input, shape index: {}]   ;;  %s176_s1 = inlined_call_operand.vmem [shape: s32[18,1], index: 1, kind: input, shape index: {}]   ;;  %s177_s2 = inlined_call_operand.hbm [shape: f32[8,128], index: 2, kind: output, shape index: {}]  }
   0x1   :  { %v15_v0 = vld [vmem:[%s176_s1] sm:$0xff]  ;;  %v17_v1 = vld [vmem:[%s176_s1 + $0x10] sm:$0xff]  ;;  %112 = vset.pattern.permute.xlu0 %v136_v2  ;;  %113 = vset.pattern.permute.xlu1 %v136_v2 }
   0x2   :  { %21 = vperm.xlu0 %112, %v15_v0   ;;  %27 = vperm.xlu1 %113, %v17_v1  }
   0x3   :  { %7 = vsyncpa [#allocation3], 0  ;;  %v16_v3 = vld [vmem:[%s176_s1 + $0x8] sm:$0xff]  ;;  %v18_v4 = vlaneseq  ;;  %v12_v7 = vld [vmem:[%s175_s0] sm:$0xff]  ;;  %v137_v9 = vmov 0.0032258064  }
   0x4   :  { %vm38_vm2 = vcmask 261120   ;;  %v13_v14 = vld [vmem:[%s175_s0 + $0x8] sm:$0xff]  ;;  %v14_v15 = vld [vmem:[%s175_s0 + $0x10] sm:$0xff]  ;;  %vm60_vm4 = vcmp.ne.s32.totalorder %v15_v0, 0  ;;  %vm61_vm5 = vcmp.ne.s32.totalorder %v16_v3, 0  ;;  %vm62_vm6 = vcmp.ne.s32.totalorder %v17_v1, 0 }
   0x5   :  { %v19_v5 = vand.u32 127, %v18_v4  ;;  %v53_v22 = vshrl.u32 %v18_v4, 7  ;;  %vm72_vm8 = vcmask 7168   ;;  %s138_s0 = smov [#allocation2]  }
   0x6   :  { %24 = vperm.xlu0 %112, %v16_v3   ;;  %s99_s20 = sshll.u32 %s138_s0, 4  ;;  %s100_s20 = int_to_ptr.vmem [resolvable:$true] %s99_s20 }
   0x7   :  { %v55_v24 = vadd.s32 16, %v53_v22  ;;  %vm87_vm10 = vcmp.eq.s32.totalorder %v53_v22, 0  ;;  %vm88_vm11 = vcmp.eq.s32.totalorder %v19_v5, 0  ;;  %s114_s22 = scalar_lea.vmem %s100_s20, 128  ;;  %p119_p1 = scmp.lt.s32.totalorder %s100_s20, %s100_s20 }
   0x8   :  { %vm89_vm12 = vmand %vm87_vm10, %vm88_vm11  ;;  %p115_p0 = scmp.ne.s32.totalorder %s100_s20, %s114_s22  ;;  %p120_p2 = scmp.lt.s32.totalorder %s114_s22, %s114_s22 }
   0x9   :  { %vm65_vm7 = vcmp.lt.s32.totalorder %v55_v24, 18 }
   0xa   :  { %vm68_vm9 = vmand %vm62_vm6, %vm65_vm7  ;;  %p121_p3 = por %p120_p2, %p119_p1 }
   0xc   :  { %p122_p4 = pnand %p121_p3, %p115_p0 }
  0x7d   :  { %v22_v6 = vpop.permute.xlu0 %21  ;;  %v28_v8 = vpop.permute.xlu1 %27 }
  0x7e   :  { %vm29_vm0 = vcmp.eq.s32.totalorder %v19_v5, %v22_v6  ;;  %vm31_vm1 = vcmp.eq.s32.totalorder %v19_v5, %v28_v8 }
  0x7f   :  { %v32_v10 = vsel %vm29_vm0, 0.9, %v137_v9  ;;  %v34_v13 = vsel %vm31_vm1, 0.9, %v137_v9 }
  0x80   :  { %v35_v11 = vmul.f32 %v32_v10, %v12_v7  ;;  %v37_v19 = vmul.f32 %v34_v13, %v14_v15 }
  0x81   :  { %v25_v12 = vpop.permute.xlu0 %24 }
  0x82   :  { %vm30_vm3 = vcmp.eq.s32.totalorder %v19_v5, %v25_v12  ;;  %v39_v16 = vsel %vm38_vm2, %v35_v11, 0.0  ;;  %v45_v21 = vsel %vm38_vm2, %v37_v19, 0.0 }
  0x83   :  { %v33_v17 = vsel %vm30_vm3, 0.9, %v137_v9  ;;  %40 = vadd.xlane.f32.xlu1 %v39_v16 }
  0x84   :  { %v36_v18 = vmul.f32 %v33_v17, %v13_v14 }
  0x86   :  { %v42_v20 = vsel %vm38_vm2, %v36_v18, 0.0 }
  0x87   :  { %43 = vadd.xlane.f32.xlu0 %v42_v20 }
  0x8b   :  { %46 = vadd.xlane.f32.xlu0 %v45_v21 }
 0x10c   :  { %v41_v23 = vpop.xlane.xlu1 %40 }
 0x10d   :  { %v48_v25 = vsub.f32 0.0, %v41_v23 }
 0x10f   :  { %v69_v27 = vsel %vm60_vm4, %v48_v25, 0.0 }
 0x110   :  { %v44_v26 = vpop.xlane.xlu0 %43  ;;  %v73_v30 = vsel %vm72_vm8, %v69_v27, 0.0 }
 0x111   :  { %v49_v28 = vsub.f32 0.0, %v44_v26 }
 0x113   :  { %v70_v29 = vsel %vm61_vm5, %v49_v28, 0.0 }
 0x114   :  { %v74_v31 = vsel %vm72_vm8, %v70_v29, 0.0  ;;  %v47_v32 = vpop.xlane.xlu0 %46 }
 0x115   :  { %v50_v33 = vsub.f32 0.0, %v47_v32  ;;  %v75_v34 = vadd.f32 %v74_v31, %v73_v30 }
 0x117   :  { %v71_v35 = vsel %vm68_vm9, %v50_v33, 0.0 }
 0x118   :  { %v76_v36 = vsel %vm72_vm8, %v71_v35, 0.0 }
 0x119   :  { %v77_v37 = vadd.f32 %v76_v36, %v75_v34 }
 0x11b   :  { %78 = vadd.xlane.f32.xlu1 %v77_v37 }
 0x1a4   :  { %v79_v38 = vpop.xlane.xlu1 %78 }
 0x1a5   :  { %v80_v39 = vrot.slane %v79_v38, 4 }
 0x1a7   :  { %v81_v40 = vadd.f32 %v80_v39, %v79_v38 }
 0x1a9   :  { %v82_v41 = vrot.slane %v81_v40, 2 }
 0x1ab   :  { %v83_v42 = vadd.f32 %v82_v41, %v81_v40 }
 0x1ad   :  { %v84_v43 = vrot.slane %v83_v42, 1 }
 0x1af   :  { %v85_v44 = vadd.f32 %v84_v43, %v83_v42 }
 0x1b1   :  { %107 = vpush %v85_v44 }
 0x1e2   :  { %s108_s21 = spop %107 }
 0x1e3   :  { %v90_v45 = vstv %s108_s21 }
 0x1e4   :  { %v91_v46 = vsel %vm89_vm12, %v90_v45, 0.0 }
 0x1e5   :  { %92 = vst [vmem:[#allocation2] sm:$0xff] %v91_v46 }
 0x1e6   :  { %125 = shalt.err (!%p122_p4)
}
 0x1e7   :  { %102 = dma.vmem_to_hbm [thread:$0]  %s100_s20, 128, %s177_s2, [#allocation3]  }
 0x1e8   :  { %134 = dma.done.wait [#allocation3], 128  }
 0x1e9   :  { %135 = vsyncadd [#allocation3], 4294967168 }
 0x1ea   :  { %106 = vsyncpa [#allocation3], 1 }

</bundles_post_ra>
